<compile_context>
chip_gen: v5e
topology: v5e:2x2
jax: 0.10.0
libtpu: 0.0.40
codegen_flags: <defaults>
</compile_context>

<pallas_src>
import functools

import jax
import jax.numpy as jnp
from jax.experimental import pallas as pl
from jax.experimental.pallas import tpu as pltpu


_TILE_BYTES = 4 * 1024 * 1024     # target bytes per x tile (double-buffered)


def _round_up(x, m):
    return (x + m - 1) // m * m


# ---------------------------------------------------------------------------
# Pallas kernels
# ---------------------------------------------------------------------------
def _sum_pool_kernel(batch_ref, x_ref, out_ref, acc_ref, *,
                     n_nodes, tn, mask_tail):
    k = pl.program_id(1)

    @pl.when(k == 0)
    def _():
        acc_ref[...] = jnp.zeros_like(acc_ref)

    batch_row = batch_ref[...]                        # [1, TN] int32
    x = x_ref[...]                                    # [TN, TC] native dtype
    if mask_tail:
        # Ragged last tile: rows >= N read garbage from the partial block.
        # Zero them explicitly (0-one-hot alone is not enough: 0*NaN = NaN
        # would still poison the MXU accumulate).
        row = k * tn + jax.lax.broadcasted_iota(jnp.int32, (x.shape[0], 1), 0)
        x = jnp.where(row < n_nodes, x, jnp.zeros_like(x))

    nb = acc_ref.shape[0]
    seg = jax.lax.broadcasted_iota(jnp.int32, (nb, x.shape[0]), 0)
    one_hot = (seg == batch_row).astype(x.dtype)      # exact 0/1, bf16-safe
    acc_ref[...] += jnp.dot(one_hot, x, preferred_element_type=jnp.float32)

    @pl.when(k == pl.num_programs(1) - 1)
    def _():
        out_ref[...] = acc_ref[...].astype(out_ref.dtype)


def _mean_pool_kernel(batch_ref, x_ref, out_ref, acc_ref, cnt_ref, *,
                      n_nodes, tn, mask_tail):
    k = pl.program_id(1)

    @pl.when(k == 0)
    def _():
        acc_ref[...] = jnp.zeros_like(acc_ref)
        cnt_ref[...] = jnp.zeros_like(cnt_ref)

    batch_row = batch_ref[...]                        # [1, TN] int32
    x = x_ref[...]                                    # [TN, TC]
    if mask_tail:
        row = k * tn + jax.lax.broadcasted_iota(jnp.int32, (x.shape[0], 1), 0)
        x = jnp.where(row < n_nodes, x, jnp.zeros_like(x))

    nb = acc_ref.shape[0]
    seg = jax.lax.broadcasted_iota(jnp.int32, (nb, x.shape[0]), 0)
    hit = seg == batch_row                            # [B_pad, TN] bool
    one_hot = hit.astype(x.dtype)
    acc_ref[...] += jnp.dot(one_hot, x, preferred_element_type=jnp.float32)
    # Counts are recomputed per C tile (cheap) rather than shared across the
    # "parallel" c axis so megacore sharding of that axis stays correct.
    cnt_ref[...] += jnp.sum(hit.astype(jnp.float32), axis=1, keepdims=True)

    @pl.when(k == pl.num_programs(1) - 1)
    def _():
        counts = jnp.maximum(cnt_ref[...], 1.0)       # empty graphs -> 0 / 1
        out_ref[...] = (acc_ref[...] / counts).astype(out_ref.dtype)


def _max_pool_kernel(tmin_ref, tcnt_ref, batch_ref, x_ref, out_ref, acc_ref):
    k = pl.program_id(1)

    @pl.when(k == 0)
    def _():
        # Empty graphs keep -inf (matches segment_max identity).
        acc_ref[...] = jnp.full(acc_ref.shape, -jnp.inf, acc_ref.dtype)

    batch_col = batch_ref[...]                        # [TN, 1] int32 (padded
    x = x_ref[...]                                    #  rows never match)
    if jnp.issubdtype(x_ref.dtype, jnp.floating):
        neg = jnp.array(-jnp.inf, x_ref.dtype)        # mask in native dtype
    else:
        # TODO(synk): integer features lose precision above 2^24 in the f32
        # accumulator; module is only used with float node features.
        neg = jnp.array(jnp.iinfo(x_ref.dtype).min, x_ref.dtype)
    neg32 = jnp.float32(-jnp.inf)

    nb = acc_ref.shape[0]
    row_b = jax.lax.broadcasted_iota(jnp.int32, (nb, 1), 0)
    g0 = tmin_ref[k]                                  # first graph in tile
    ng = tcnt_ref[k]                                  # graphs spanned by tile

    def body(i, cur):
        b = g0 + i
        sel = batch_col == b                                      # [TN, 1]
        tile_max = jnp.max(jnp.where(sel, x, neg), axis=0,
                           keepdims=True).astype(jnp.float32)     # [1, TC]
        return jnp.maximum(cur, jnp.where(row_b == b, tile_max, neg32))

    # Accumulate the per-tile result in registers; ONE full-block store.
    acc_ref[...] = jax.lax.fori_loop(0, ng, body, acc_ref[...])

    @pl.when(k == pl.num_programs(1) - 1)
    def _():
        out_ref[...] = acc_ref[...].astype(out_ref.dtype)


# ---------------------------------------------------------------------------
# Wrapper
# ---------------------------------------------------------------------------
def pool_pallas(x, batch, num_graphs, pool_type="mean_pool", _tn_override=None):
    if pool_type not in ("mean_pool", "sum_pool", "max_pool"):
        # TODO(synk): sag_pool (SAGPooling) not implemented.
        raise NotImplementedError("sag_pool branch not implemented")

    N, C = x.shape
    B = int(num_graphs)
    itemsize = jnp.dtype(x.dtype).itemsize

    # ---- channel (lane) tiling: never pad or copy x along C ----------------
    if C % 128 == 0:
        TC = None
        for cand in (512, 256, 128):
            if C % cand == 0 and C // cand >= 2:      # >=2 C tiles keeps both
                TC = cand                             # v7x TensorCores busy
                break
        if TC is None:                                # C == 128
            TC = C
    else:
        TC = C        # full-extent lane block (allowed: equals the array dim)
    num_c = C // TC

    # ---- node (reduction, sublane) tiling -----------------------------------
    if _tn_override is not None:
        TN = int(_tn_override)
    elif N <= 1024:
        TN = N                                        # single tile, no padding
    else:
        TN = _TILE_BYTES // (TC * itemsize)
        TN = max(256, min(2048, TN))
        TN = (TN // 128) * 128                        # batch row block aligned
    N_pad = _round_up(max(N, 1), TN)
    num_k = N_pad // TN
    mask_tail = (N_pad != N)

    B_pad = _round_up(max(B, 1), 8)

    batch_i32 = batch.astype(jnp.int32)
    if mask_tail:
        # Pad only the tiny assignment vector; padded nodes get an
        # out-of-range graph id so they never contribute.
        batch_p = jnp.full((N_pad,), B_pad, jnp.int32).at[:N].set(batch_i32)
    else:
        batch_p = batch_i32

    grid = (num_c, num_k)
    out_shape = jax.ShapeDtypeStruct((B_pad, C), x.dtype)
    cparams = pltpu.CompilerParams(
        dimension_semantics=("parallel", "arbitrary"),
        vmem_limit_bytes=32 * 1024 * 1024)
    cost = pl.CostEstimate(
        flops=2 * B_pad * N * C,
        transcendentals=0,
        bytes_accessed=N * C * itemsize + N_pad * 4 + B_pad * C * itemsize)

    if pool_type == "max_pool":
        # Per-N-tile graph-id range (min, count) via scalar prefetch: the
        # kernel only loops over graphs present in the tile.  Tight (1-3) for
        # sorted PyG batches; a looser-but-correct range if unsorted.
        if mask_tail:
            b_rng = jnp.concatenate(
                [batch_i32,
                 jnp.full((N_pad - N,), batch_i32[N - 1], jnp.int32)])
        else:
            b_rng = batch_i32
        b2 = b_rng.reshape(num_k, TN)
        tmin = jnp.clip(jnp.min(b2, axis=1), 0, B_pad - 1).astype(jnp.int32)
        tmax = jnp.clip(jnp.max(b2, axis=1), 0, B_pad - 1).astype(jnp.int32)
        tcnt = (tmax - tmin + 1).astype(jnp.int32)

        batch_in = batch_p.reshape(N_pad, 1)          # column layout for mask
        grid_spec = pltpu.PrefetchScalarGridSpec(
            num_scalar_prefetch=2,
            grid=grid,
            in_specs=[pl.BlockSpec((TN, 1), lambda c, k, tmn, tct: (k, 0)),
                      pl.BlockSpec((TN, TC), lambda c, k, tmn, tct: (k, c))],
            out_specs=pl.BlockSpec((B_pad, TC), lambda c, k, tmn, tct: (0, c)),
            scratch_shapes=[pltpu.VMEM((B_pad, TC), jnp.float32)])
        out = pl.pallas_call(
            _max_pool_kernel,
            out_shape=out_shape,
            grid_spec=grid_spec,
            compiler_params=cparams,
            cost_estimate=cost,
        )(tmin, tcnt, batch_in, x)
    else:
        batch_in = batch_p.reshape(1, N_pad)          # row layout for one-hot
        if pool_type == "sum_pool":
            kernel = functools.partial(_sum_pool_kernel, n_nodes=N, tn=TN,
                                       mask_tail=mask_tail)
            scratch = [pltpu.VMEM((B_pad, TC), jnp.float32)]
        else:
            kernel = functools.partial(_mean_pool_kernel, n_nodes=N, tn=TN,
                                       mask_tail=mask_tail)
            scratch = [pltpu.VMEM((B_pad, TC), jnp.float32),
                       pltpu.VMEM((B_pad, 1), jnp.float32)]
        grid_spec = pltpu.PrefetchScalarGridSpec(
            num_scalar_prefetch=0,
            grid=grid,
            in_specs=[pl.BlockSpec((1, TN), lambda c, k: (0, k)),
                      pl.BlockSpec((TN, TC), lambda c, k: (k, c))],
            out_specs=pl.BlockSpec((B_pad, TC), lambda c, k: (0, c)),
            scratch_shapes=scratch)
        out = pl.pallas_call(
            kernel,
            out_shape=out_shape,
            grid_spec=grid_spec,
            compiler_params=cparams,
            cost_estimate=cost,
        )(batch_in, x)

    return out[:B, :]


# ---------------------------------------------------------------------------
# Module wrapper (mirrors Pool.forward)
# ---------------------------------------------------------------------------
class Pool:
    def __init__(self, in_channels, ratio=1.0, key=jax.random.PRNGKey(0)):
        # Parameters matching the PyTorch __init__ shapes; only exercised by
        # the (unimplemented) sag_pool path, not by mean/max/sum pooling.
        k1, k2 = jax.random.split(key, 2)
        self.lin1_w = jax.random.normal(k1, (in_channels, in_channels * 2),
                                        jnp.float32) * 0.02
        self.lin1_b = jnp.zeros((in_channels,), jnp.float32)
        self.sag_score_w = jax.random.normal(k2, (1, in_channels),
                                             jnp.float32) * 0.02
        self.sag_score_b = jnp.zeros((1,), jnp.float32)
        self.ratio = ratio

    def __call__(self, x, edge, batch, num_graphs, type="mean_pool"):
        # edge is unused by the mean/max/sum pooling paths (matches PyTorch).
        return pool_pallas(x, batch, num_graphs, pool_type=type)


# ---------------------------------------------------------------------------
# Demo / correctness check
# ---------------------------------------------------------------------------
if __name__ == "__main__":
    def ref_pool(x, batch, B, kind):
        s = jax.ops.segment_sum(x, batch, num_segments=B)
        if kind == "sum_pool":
            return s
        if kind == "mean_pool":
            cnt = jax.ops.segment_sum(jnp.ones((x.shape[0], 1), x.dtype),
                                      batch, num_segments=B)
            return s / jnp.maximum(cnt, 1.0)
        return jax.ops.segment_max(x, batch, num_segments=B)

    # 1) Module-sized smoke test: 2 graphs, 8 nodes, 32 channels.
    N, C, B = 8, 32, 2
    key = jax.random.PRNGKey(0)
    x = jax.random.normal(key, (N, C), jnp.float32)
    batch = jnp.array([0, 0, 0, 0, 1, 1, 1, 1], dtype=jnp.int32)
    edge = jnp.zeros((2, 1), dtype=jnp.int32)   # unused by mean/max/sum paths
    pool = Pool(in_channels=C, ratio=1.0)
    for kind in ("mean_pool", "sum_pool", "max_pool"):
        out = pool(x, edge, batch, num_graphs=B, type=kind)
        jax.block_until_ready(out)
        ref = ref_pool(x, batch, B, kind)
        assert jnp.allclose(out, ref, atol=1e-5, rtol=1e-5), f"small {kind}"

    # 2) Multi-tile (aligned) path: several N tiles + two C tiles.
    N, C, B = 384, 256, 5
    x = jax.random.normal(jax.random.PRNGKey(1), (N, C), jnp.float32)
    batch = (jnp.arange(N) * B // N).astype(jnp.int32)   # sorted, all non-empty
    for kind in ("mean_pool", "sum_pool", "max_pool"):
        out = pool_pallas(x, batch, B, pool_type=kind, _tn_override=128)
        jax.block_until_ready(out)
        ref = ref_pool(x, batch, B, kind)
        assert jnp.allclose(out, ref, atol=1e-4, rtol=1e-4), f"aligned {kind}"

    # 3) Ragged tail: N not a multiple of the N tile (partial x block, masked
    #    in-kernel; x is never copied/padded wrapper-side).
    N, C, B = 200, 256, 3
    x = jax.random.normal(jax.random.PRNGKey(2), (N, C), jnp.float32)
    batch = (jnp.arange(N) * B // N).astype(jnp.int32)
    for kind in ("mean_pool", "sum_pool", "max_pool"):
        out = pool_pallas(x, batch, B, pool_type=kind, _tn_override=128)
        jax.block_until_ready(out)
        ref = ref_pool(x, batch, B, kind)
        assert jnp.allclose(out, ref, atol=1e-4, rtol=1e-4), f"ragged {kind}"

    print("KERNEL_OK")
</pallas_src>

<mosaic_0001>
module attributes {stable_mosaic.version = 11 : i64} {
  func.func @_mean_pool_kernel(%arg0: i32, %arg1: i32, %arg2: memref<1x8xi32, #tpu.memory_space<vmem>>, %arg3: memref<8x32xf32, #tpu.memory_space<vmem>>, %arg4: memref<8x32xf32, #tpu.memory_space<vmem>>, %arg5: memref<8x32xf32, #tpu.memory_space<vmem>>, %arg6: memref<8x1xf32, #tpu.memory_space<vmem>>) attributes {dimension_semantics = [#tpu.dimension_semantics<parallel>, #tpu.dimension_semantics<arbitrary>], iteration_bounds = array<i64: 1, 1>, scalar_prefetch = 0 : i64, scratch_operands = 2 : i64, tpu.core_type = #tpu.core_type<tc>, window_params = [{transform_indices = @transform_0, window_bounds = array<i64: 1, 8>}, {transform_indices = @transform_1, window_bounds = array<i64: 8, 32>}, {transform_indices = @transform_2, window_bounds = array<i64: 8, 32>}]} {
    %c0_i32 = arith.constant 0 : i32
    %0 = arith.cmpi eq, %arg1, %c0_i32 : i32
    %1 = arith.extui %0 : i1 to i32
    %c0_i32_0 = arith.constant 0 : i32
    %2 = arith.cmpi ne, %1, %c0_i32_0 : i32
    scf.if %2 {
      %cst_15 = arith.constant 0.000000e+00 : f32
      %24 = vector.broadcast %cst_15 : f32 to vector<8x32xf32>
      %c0_16 = arith.constant 0 : index
      %c0_17 = arith.constant 0 : index
      %25 = vector.load %arg5[%c0_16, %c0_17] : memref<8x32xf32, #tpu.memory_space<vmem>>, vector<8x32xf32>
      tpu.vector_store %arg5[%c0_16, %c0_17], %24 {strides = array<i32>} : memref<8x32xf32, #tpu.memory_space<vmem>>, vector<8x32xf32>,
      %cst_18 = arith.constant 0.000000e+00 : f32
      %26 = vector.broadcast %cst_18 : f32 to vector<8x1xf32>
      %c0_19 = arith.constant 0 : index
      %c0_20 = arith.constant 0 : index
      %27 = vector.load %arg6[%c0_19, %c0_20] : memref<8x1xf32, #tpu.memory_space<vmem>>, vector<8x1xf32>
      tpu.vector_store %arg6[%c0_19, %c0_20], %26 {strides = array<i32>} : memref<8x1xf32, #tpu.memory_space<vmem>>, vector<8x1xf32>,
    } else {
    }
    %c0 = arith.constant 0 : index
    %c0_1 = arith.constant 0 : index
    %3 = vector.load %arg2[%c0, %c0_1] : memref<1x8xi32, #tpu.memory_space<vmem>>, vector<1x8xi32>
    %c0_2 = arith.constant 0 : index
    %c0_3 = arith.constant 0 : index
    %4 = vector.load %arg3[%c0_2, %c0_3] : memref<8x32xf32, #tpu.memory_space<vmem>>, vector<8x32xf32>
    %5 = tpu.iota {dimensions = array<i32: 0>} : vector<8x8xi32>
    %6 = vector.broadcast %3 : vector<1x8xi32> to vector<8x8xi32>
    %7 = arith.cmpi eq, %5, %6 : vector<8x8xi32>
    %8 = arith.extui %7 : vector<8x8xi1> to vector<8x8xi32>
    %9 = arith.sitofp %8 : vector<8x8xi32> to vector<8x8xf32>
    %c0_4 = arith.constant 0 : index
    %c0_5 = arith.constant 0 : index
    %10 = vector.load %arg5[%c0_4, %c0_5] : memref<8x32xf32, #tpu.memory_space<vmem>>, vector<8x32xf32>
    %cst = arith.constant dense<0.000000e+00> : vector<8x32xf32>
    %11 = tpu.matmul %9, %4, %cst {dimension_numbers = #tpu.dot_dimension_numbers<[1], [0], [0], [1], [0, 0, 1, 1], [], []>} : vector<8x8xf32>, vector<8x32xf32>, vector<8x32xf32> -> vector<8x32xf32>
    %12 = arith.addf %10, %11 : vector<8x32xf32>
    %c0_6 = arith.constant 0 : index
    %c0_7 = arith.constant 0 : index
    %13 = vector.load %arg5[%c0_6, %c0_7] : memref<8x32xf32, #tpu.memory_space<vmem>>, vector<8x32xf32>
    tpu.vector_store %arg5[%c0_6, %c0_7], %12 {strides = array<i32>} : memref<8x32xf32, #tpu.memory_space<vmem>>, vector<8x32xf32>,
    %c0_8 = arith.constant 0 : index
    %c0_9 = arith.constant 0 : index
    %14 = vector.load %arg6[%c0_8, %c0_9] : memref<8x1xf32, #tpu.memory_space<vmem>>, vector<8x1xf32>
    %15 = arith.extui %7 : vector<8x8xi1> to vector<8x8xi32>
    %16 = arith.sitofp %15 : vector<8x8xi32> to vector<8x8xf32>
    %cst_10 = arith.constant dense<0.000000e+00> : vector<8xf32>
    %17 = vector.multi_reduction <add>, %16, %cst_10 [1] : vector<8x8xf32> to vector<8xf32>
    %18 = vector.shape_cast %17 : vector<8xf32> to vector<8x1xf32>
    %19 = arith.addf %14, %18 : vector<8x1xf32>
    %c0_11 = arith.constant 0 : index
    %c0_12 = arith.constant 0 : index
    %20 = vector.load %arg6[%c0_11, %c0_12] : memref<8x1xf32, #tpu.memory_space<vmem>>, vector<8x1xf32>
    tpu.vector_store %arg6[%c0_11, %c0_12], %19 {strides = array<i32>} : memref<8x1xf32, #tpu.memory_space<vmem>>, vector<8x1xf32>,
    %c0_i32_13 = arith.constant 0 : i32
    %21 = arith.cmpi eq, %arg1, %c0_i32_13 : i32
    %22 = arith.extui %21 : i1 to i32
    %c0_i32_14 = arith.constant 0 : i32
    %23 = arith.cmpi ne, %22, %c0_i32_14 : i32
    scf.if %23 {
      %c0_15 = arith.constant 0 : index
      %c0_16 = arith.constant 0 : index
      %24 = vector.load %arg6[%c0_15, %c0_16] : memref<8x1xf32, #tpu.memory_space<vmem>>, vector<8x1xf32>
      %cst_17 = arith.constant 1.000000e+00 : f32
      %25 = vector.broadcast %cst_17 : f32 to vector<8x1xf32>
      %26 = arith.maximumf %24, %25 : vector<8x1xf32>
      %c0_18 = arith.constant 0 : index
      %c0_19 = arith.constant 0 : index
      %27 = vector.load %arg5[%c0_18, %c0_19] : memref<8x32xf32, #tpu.memory_space<vmem>>, vector<8x32xf32>
      %28 = vector.broadcast %26 : vector<8x1xf32> to vector<8x32xf32>
      %29 = arith.divf %27, %28 : vector<8x32xf32>
      %c0_20 = arith.constant 0 : index
      %c0_21 = arith.constant 0 : index
      %30 = vector.load %arg4[%c0_20, %c0_21] : memref<8x32xf32, #tpu.memory_space<vmem>>, vector<8x32xf32>
      tpu.vector_store %arg4[%c0_20, %c0_21], %29 {strides = array<i32>} : memref<8x32xf32, #tpu.memory_space<vmem>>, vector<8x32xf32>,
    } else {
    }
    return
  }
  func.func @transform_0(%arg0: i32, %arg1: i32) -> (i32, i32) {
    %c0_i32 = arith.constant 0 : i32
    %c0_i32_0 = arith.constant 0 : i32
    return %c0_i32, %arg1 : i32, i32
  }
  func.func @transform_1(%arg0: i32, %arg1: i32) -> (i32, i32) {
    %c0_i32 = arith.constant 0 : i32
    return %arg1, %arg0 : i32, i32
  }
  func.func @transform_2(%arg0: i32, %arg1: i32) -> (i32, i32) {
    %c0_i32 = arith.constant 0 : i32
    %c0_i32_0 = arith.constant 0 : i32
    return %c0_i32, %arg0 : i32, i32
  }
}

</mosaic_0001>

<bundles_post_ra>
// kernel: tpu_custom_call.1
= control target key start
LH: loop header
LB: loop body
LE: loop exit
PB: predicated region body
PF: predicated region fallthrough
CT: control target
= control target key end

     0   :  { %7 = vsyncpa [#allocation5], 0  ;;  %s259_s0 = inlined_call_operand.hbm [shape: s32[1,8], index: 0, kind: input, shape index: {}]   ;;  %s260_s1 = inlined_call_operand.hbm [shape: f32[8,32], index: 1, kind: input, shape index: {}]   ;;  %s261_s2 = inlined_call_operand.hbm [shape: f32[8,32], index: 2, kind: output, shape index: {}]  }
   0x1   :  { %8 = vsyncpa [#allocation8], 0 }
   0x2   :  { %9 = vsyncpa [#allocation6], 0  ;;  %s15_s11 = sshll.u32 %s259_s0, 4  ;;  %s225_s12 = smov [#allocation4]   ;;  %s16_s11 = int_to_ptr.hbm [resolvable:$true] %s15_s11 }
   0x3   :  { %s17_s13 = sshll.u32 %s225_s12, 4  ;;  %s26_s16 = sshll.u32 %s260_s1, 4  ;;  %s18_s13 = int_to_ptr.vmem [resolvable:$true] %s17_s13  ;;  %s27_s16 = int_to_ptr.hbm [resolvable:$true] %s26_s16 }
   0x4   :  { %20 = dma.hbm_to_vmem [thread:$0]  %s16_s11, 16, %s18_s13, [#allocation5]  }
   0x5   :  { %s226_s17 = smov [#allocation7]  }
   0x6   :  { %s28_s18 = sshll.u32 %s226_s17, 4  ;;  %s29_s18 = int_to_ptr.vmem [resolvable:$true] %s28_s18 }
   0x7   :  { %31 = dma.hbm_to_vmem [thread:$0]  %s27_s16, 128, %s29_s18, [#allocation8]  }
   0x8   :  { %219 = dma.done.wait [#allocation5], 16  }
   0x9   :  { %220 = vsyncadd [#allocation5], 4294967280 }
   0xa   :  { %221 = dma.done.wait [#allocation8], 128  }
   0xb   :  { %222 = vsyncadd [#allocation8], 4294967168  ;;  %vm44_vm0 = vcmask 261120   ;;  %vm46_vm1 = vcmask 7168   ;;  %v50_v0 = vlaneseq  ;;  %v227_v1 = vmov 0.0   ;;  %v49_v6 = vld [vmem:[#allocation7] sm:$0xff] }
   0xc   :  { %45 = vst.msk [vmem:[#allocation2] sm:$0xff] %vm44_vm0, %v227_v1  ;;  %v144_v3 = vld [vmem:[#allocation4] ss:$0 sm:$0xff]  ;;  %vm57_vm2 = vcmask 64512   ;;  %76 = vmatpush.msra.mxu0 %v49_v6  ;;  %v228_v7 = vmov 0   ;;  %s229_s0 = smov [#allocation9]  }
   0xd   :  { %47 = vst.msk [vmem:[#allocation3] sm:$0xff] %vm46_vm1, %v227_v1  ;;  %v51_v2 = vshrl.u32 %v50_v0, 7  ;;  %143 = vset.pattern.permute.xlu0 %v228_v7  ;;  %s123_s1 = sshll.u32 %s229_s0, 4  ;;  %s125_s21 = sshll.u32 %s261_s2, 4  ;;  %s124_s1 = int_to_ptr.vmem [resolvable:$true] %s123_s1  ;;  %s126_s21 = int_to_ptr.hbm [resolvable:$true] %s125_s21 }
   0xf   :  { %vm53_vm3 = vcmp.eq.s32.totalorder %v51_v2, %v144_v3 }
  0x10   :  { %v136_v4 = vsel %vm53_vm3, 1.0, %v227_v1 }
  0x11   :  { %v85_v5 = vsel %vm57_vm2, %v136_v4, 0.0  ;;  %137 = vmatmul.msk.f32.vlgmr.msra.gmra.mxu0 %vm57_vm2, %v136_v4 }
  0x12   :  { %86 = vadd.xlane.f32.xlu0 %v85_v5 }
  0x13   :  { %v56_v13 = vld [vmem:[#allocation2] sm:$0xff] }
  0x14   :  { %v84_v8 = vld [vmem:[#allocation3] sm:$0xff] }
  0x85   :  { %v87_v9 = vpop.xlane.xlu0 %86 }
  0x86   :  { %v88_v10 = vadd.f32 %v87_v9, %v84_v8 }
  0x88   :  { %90 = vst.msk [vmem:[#allocation3] sm:$0xff] %vm46_vm1, %v88_v10 }
  0x8e   :  { %v78_v14 = vpop.f32.mrf.mxu0 }
  0x8f   :  { %v94_v11 = vld [vmem:[#allocation3] sm:$0xff]  ;;  %v81_v15 = vadd.f32 %v78_v14, %v56_v13 }
  0x90   :  { %v95_v12 = vmax.f32 %v94_v11, 1.0 }
  0x91   :  { %83 = vst.msk [vmem:[#allocation2] sm:$0xff] %vm44_vm0, %v81_v15 }
  0x92   :  { %99 = vperm.xlu0 %143, %v95_v12  }
  0x98   :  { %v96_v25 = vld [vmem:[#allocation2] sm:$0xff] }
 0x104   :  { %v100_v16 = vpop.permute.xlu0 %99 }
 0x105   :  { %145 = vrcp.f32 %v100_v16  ;;  %v113_v20 = vand.u32 2147483648, %v100_v16  ;;  %v111_v22 = vand.u32 2147483647, %v100_v16  ;;  %vm107_vm5 = vweird.f32 %v100_v16 }
 0x107   :  { %v114_v24 = vor.u32 1.1754944e-38, %v113_v20  ;;  %vm112_vm7 = vcmp.eq.f32.partialorder %v111_v22, 8.507059e+37 }
 0x10b   :  { %v146_v17 = vpop.eup %145 }
 0x10c   :  { %v103_v18 = vmul.f32 %v146_v17, %v100_v16  ;;  %vm108_vm4 = vweird.f32 %v146_v17 }
 0x10d   :  { %vm109_vm6 = vmor %vm107_vm5, %vm108_vm4 }
 0x10e   :  { %v104_v19 = vsub.f32 1.0, %v103_v18 }
 0x110   :  { %v105_v21 = vmul.f32 %v146_v17, %v104_v19 }
 0x112   :  { %v106_v23 = vadd.f32 %v146_v17, %v105_v21 }
 0x114   :  { %v110_v26 = vsel %vm109_vm6, %v146_v17, %v106_v23 }
 0x115   :  { %v115_v27 = vsel %vm112_vm7, %v114_v24, %v110_v26 }
 0x116   :  { %v116_v28 = vmul.f32 %v115_v27, %v96_v25 }
 0x118   :  { %117 = vst.msk [vmem:[#allocation9] sm:$0xff] %vm44_vm0, %v116_v28 }
 0x119   :  { %128 = dma.vmem_to_hbm [thread:$0]  %s124_s1, 128, %s126_s21, [#allocation6]  }
 0x11a   :  { %223 = dma.done.wait [#allocation6], 128  }
 0x11b   :  { %224 = vsyncadd [#allocation6], 4294967168 }
 0x11c   :  { %133 = vsyncpa [#allocation5], 1 }
 0x11d   :  { %134 = vsyncpa [#allocation8], 1 }
 0x11e   :  { %135 = vsyncpa [#allocation6], 1 }

</bundles_post_ra>
